<compile_context>
chip_gen: v7x
topology: tpu7x:2x2x1
jax: 0.10.0
libtpu: 0.0.40
codegen_flags: <defaults>
</compile_context>

<pallas_src>
import jax
import jax.numpy as jnp
from jax.experimental import pallas as pl
from jax.experimental.pallas import tpu as pltpu

BN_EPS = 1e-5


def _round_up(x, m):
    return ((x + m - 1) // m) * m


def _cdiv(a, b):
    return -(-a // b)


def _choose_node_tiling(N, tile_n):
    """Pick (TILE_N, n_tiles, N_pad) with minimal padding and >=2 tiles when possible."""
    n_tiles = max(1, _cdiv(N, tile_n))
    if n_tiles == 1 and N > 8:
        n_tiles = 2                      # keep both v7x TensorCores busy
    tile = _round_up(_cdiv(N, n_tiles), 8)
    n_tiles = _cdiv(N, tile)             # re-derive after rounding
    return tile, n_tiles, n_tiles * tile


def _sign_kernel(x_ref, w_ref, b_ref, wout_ref, bout_ref, o_ref):
    """One (node-tile, hop) grid step.

    x_ref    [TILE_N, F]          input dtype  hop-k slice of node tile n (streamed)
    w_ref    [K+1, F, H_pad]      bf16         BN-folded hop Linear weights (resident)
    b_ref    [K+1, H_pad]         f32          BN-folded hop Linear biases (resident)
    wout_ref [K+1, H_pad, O_pad]  bf16         per-hop slices of lin_out weight (resident)
    bout_ref [1, O_pad]           f32          lin_out bias (resident)
    o_ref    [TILE_N, O_pad]      f32          output tile, resident across hop axis
    """
    k = pl.program_id(1)

    @pl.when(k == 0)
    def _init():
        # Initialize the resident output block with the lin_out bias.
        o_ref[...] = jnp.broadcast_to(bout_ref[...], o_ref.shape)

    # Linear_k (with BN folded in) -> ReLU.  Dropout (eval) == identity.
    x = x_ref[...].astype(w_ref.dtype)                       # in-register cast to bf16
    h = jnp.dot(x, w_ref[k], preferred_element_type=jnp.float32)
    h = jnp.maximum(h + b_ref[pl.ds(k, 1), :], 0.0)
    # concat_k(h_k) @ W_out == sum_k h_k @ W_out[k] -> accumulate into o_ref.
    # (If a profile shows spill / serialized MXU pushes, split this pair of
    #  matmuls into 128-row chunks with lax.fori_loop(..., unroll=True).)
    o_ref[...] += jnp.dot(h.astype(wout_ref.dtype), wout_ref[k],
                          preferred_element_type=jnp.float32)


def prepare_sign_params(w, b, gamma, beta, run_mean, run_var, w_out, b_out,
                        *, compute_dtype=jnp.bfloat16):
    """Fold eval-mode BN into the hop Linears and pad/cast the (small) weights.

    Depends only on parameters / BN running stats -> compute ONCE and cache.

    w:     [K+1, F, H]   pre-transposed per-hop Linear weights
    b, gamma, beta, run_mean, run_var: [K+1, H]
    w_out: [K+1, H, O]   per-hop slices of lin_out weight;  b_out: [1, O]
    """
    Kp1, F, H = w.shape
    O = w_out.shape[-1]
    H_pad = _round_up(H, 128)   # (round to 256 on v6e/v7x only if MXU-bound and H > 128)
    O_pad = _round_up(O, 128)

    scale = gamma * jax.lax.rsqrt(run_var + BN_EPS)           # [K+1, H]
    w_fold = w * scale[:, None, :]                            # [K+1, F, H]
    b_fold = (b - run_mean) * scale + beta                    # [K+1, H]

    def pad(a, shape):
        return jnp.pad(a, [(0, s - d) for d, s in zip(a.shape, shape)])

    return dict(
        w=pad(w_fold, (Kp1, F, H_pad)).astype(compute_dtype),
        b=pad(b_fold, (Kp1, H_pad)).astype(jnp.float32),
        w_out=pad(w_out, (Kp1, H_pad, O_pad)).astype(compute_dtype),
        b_out=pad(jnp.reshape(b_out, (1, O)), (1, O_pad)).astype(jnp.float32),
        out_features=O,
    )


def sign_forward(xs, params, *, tile_n=512):
    """Eval-mode SIGN forward.  xs: [K+1, N, F] (native dtype).  Returns [N, O] f32."""
    Kp1, N, F = xs.shape
    w_p, b_p = params["w"], params["b"]
    wout_p, bout_p = params["w_out"], params["b_out"]
    O = params["out_features"]
    H_pad = w_p.shape[-1]
    O_pad = wout_p.shape[-1]

    TILE_N, n_tiles, N_pad = _choose_node_tiling(N, tile_n)
    if N_pad != N:
        # Small (<= 8 * n_tiles rows) node padding; feature axis stays unpadded.
        xs = jnp.pad(xs, ((0, 0), (0, N_pad - N), (0, 0)))

    grid = (n_tiles, Kp1)   # node tiles (parallel) x hops (reduction, innermost)

    grid_spec = pltpu.PrefetchScalarGridSpec(
        num_scalar_prefetch=0,
        grid=grid,
        in_specs=[
            # x_k node tile: the only per-step streamed input; last dim = full F.
            # (optional sweep once DMA-exposed: pipeline_mode=pl.Buffered(3))
            pl.BlockSpec((pl.Squeezed(), TILE_N, F), lambda n, k: (k, n, 0)),
            # Grid-invariant weights/biases: constant block index -> fetched once.
            pl.BlockSpec((Kp1, F, H_pad), lambda n, k: (0, 0, 0)),   # W'_k (all hops)
            pl.BlockSpec((Kp1, H_pad), lambda n, k: (0, 0)),         # b'_k (all hops)
            pl.BlockSpec((Kp1, H_pad, O_pad), lambda n, k: (0, 0, 0)),  # W_out slices
            pl.BlockSpec((1, O_pad), lambda n, k: (0, 0)),           # b_out
        ],
        out_specs=pl.BlockSpec((TILE_N, O_pad), lambda n, k: (n, 0)),
    )

    # VMEM budget derived from actual block footprint (capped well below the
    # 64 MiB physical VMEM of a v7x TensorCore).
    x_item = jnp.dtype(xs.dtype).itemsize
    w_item = jnp.dtype(w_p.dtype).itemsize
    block_bytes = (2 * TILE_N * F * x_item                # x double-buffer
                   + 2 * TILE_N * O_pad * 4               # output double-buffer
                   + w_p.size * w_item + wout_p.size * w_item
                   + b_p.size * 4 + bout_p.size * 4       # resident weights/biases
                   + TILE_N * H_pad * 4)                  # h intermediate
    vmem_limit = int(min(max(2 * block_bytes + (4 << 20), 16 << 20), 40 << 20))

    cost = pl.CostEstimate(
        flops=2 * N_pad * Kp1 * (F * H_pad + H_pad * O_pad),
        transcendentals=0,
        bytes_accessed=(xs.size * x_item
                        + (w_p.size + wout_p.size) * w_item
                        + (b_p.size + bout_p.size) * 4
                        + N_pad * O_pad * 4),
    )

    out_pad = pl.pallas_call(
        _sign_kernel,
        out_shape=jax.ShapeDtypeStruct((N_pad, O_pad), jnp.float32),
        grid_spec=grid_spec,
        compiler_params=pltpu.CompilerParams(
            dimension_semantics=("parallel", "arbitrary"),
            vmem_limit_bytes=vmem_limit,
        ),
        cost_estimate=cost,
    )(xs, w_p, b_p, wout_p, bout_p)

    return out_pad[:N, :O]


def sign_reference(xs, w, b, gamma, beta, run_mean, run_var, w_out, b_out):
    """Pure-JAX f32 reference matching the PyTorch eval-mode math."""
    hs = []
    for k in range(xs.shape[0]):
        h = xs[k] @ w[k] + b[k]
        h = (h - run_mean[k]) * jax.lax.rsqrt(run_var[k] + BN_EPS) * gamma[k] + beta[k]
        h = jnp.maximum(h, 0.0)
        hs.append(h)
    hcat = jnp.concatenate(hs, axis=-1)
    wcat = jnp.concatenate([w_out[k] for k in range(xs.shape[0])], axis=0)
    return hcat @ wcat + b_out[0]


if __name__ == "__main__":
    # Small shapes consistent with the module: K hops, N nodes, feature dims.
    K = 3
    N = 64
    in_channels = 16
    hidden_channels = 32
    out_channels = 8

    key = jax.random.PRNGKey(0)
    keys = jax.random.split(key, 9)

    xs = jax.random.normal(keys[0], (K + 1, N, in_channels), jnp.float32)
    # Per-hop Linear weights, stored pre-transposed [F, H].
    w = jax.random.normal(keys[1], (K + 1, in_channels, hidden_channels),
                          jnp.float32) * 0.1
    b = jax.random.normal(keys[2], (K + 1, hidden_channels), jnp.float32) * 0.1
    # BatchNorm1d params + running stats (eval mode), deterministic.
    gamma = 1.0 + 0.05 * jax.random.normal(keys[3], (K + 1, hidden_channels), jnp.float32)
    beta = 0.05 * jax.random.normal(keys[4], (K + 1, hidden_channels), jnp.float32)
    run_mean = 0.1 * jax.random.normal(keys[5], (K + 1, hidden_channels), jnp.float32)
    run_var = 1.0 + 0.1 * jax.random.uniform(keys[6], (K + 1, hidden_channels), jnp.float32)
    # lin_out: weight [(K+1)*H, O] split per hop -> [K+1, H, O]; bias [1, O].
    w_out = jax.random.normal(keys[7], (K + 1, hidden_channels, out_channels),
                              jnp.float32) * 0.1
    b_out = 0.1 * jax.random.normal(keys[8], (1, out_channels), jnp.float32)

    # One-time parameter preparation (BN fold + pad/cast), cached across calls.
    params = prepare_sign_params(w, b, gamma, beta, run_mean, run_var, w_out, b_out)
    params = jax.tree_util.tree_map(
        lambda a: jax.block_until_ready(a) if isinstance(a, jax.Array) else a, params)

    out = sign_forward(xs, params)
    out = jax.block_until_ready(out)

    ref = sign_reference(xs, w, b, gamma, beta, run_mean, run_var, w_out, b_out)
    assert out.shape == (N, out_channels)
    # bf16 weights/activations with f32 accumulation -> relaxed tolerance vs f32 ref.
    assert jnp.allclose(out, ref, atol=5e-2, rtol=5e-2), "mismatch vs reference"

    print("KERNEL_OK")
</pallas_src>

<mosaic_0001>
module attributes {stable_mosaic.version = 11 : i64} {
  func.func @_sign_kernel(%arg0: i32, %arg1: i32, %arg2: memref<1x32x16xf32, #tpu.memory_space<vmem>>, %arg3: memref<4x16x128xbf16, #tpu.memory_space<vmem>>, %arg4: memref<4x128xf32, #tpu.memory_space<vmem>>, %arg5: memref<4x128x128xbf16, #tpu.memory_space<vmem>>, %arg6: memref<1x128xf32, #tpu.memory_space<vmem>>, %arg7: memref<32x128xf32, #tpu.memory_space<vmem>>) attributes {dimension_semantics = [#tpu.dimension_semantics<parallel>, #tpu.dimension_semantics<arbitrary>], iteration_bounds = array<i64: 2, 4>, scalar_prefetch = 0 : i64, scratch_operands = 0 : i64, tpu.core_type = #tpu.core_type<tc>, window_params = [{transform_indices = @transform_0, window_bounds = array<i64: 1, 32, 16>}, {pipeline_mode = #tpu.pipeline_mode<synchronous>, transform_indices = @transform_1, window_bounds = array<i64: 4, 16, 128>}, {pipeline_mode = #tpu.pipeline_mode<synchronous>, transform_indices = @transform_2, window_bounds = array<i64: 4, 128>}, {pipeline_mode = #tpu.pipeline_mode<synchronous>, transform_indices = @transform_3, window_bounds = array<i64: 4, 128, 128>}, {pipeline_mode = #tpu.pipeline_mode<synchronous>, transform_indices = @transform_4, window_bounds = array<i64: 1, 128>}, {transform_indices = @transform_5, window_bounds = array<i64: 32, 128>}]} {
    %c0_i32 = arith.constant 0 : i32
    %0 = arith.cmpi eq, %arg1, %c0_i32 : i32
    %1 = arith.extui %0 : i1 to i32
    %c0_i32_0 = arith.constant 0 : i32
    %2 = arith.cmpi ne, %1, %c0_i32_0 : i32
    scf.if %2 {
      %c0_14 = arith.constant 0 : index
      %c0_15 = arith.constant 0 : index
      %24 = vector.load %arg6[%c0_14, %c0_15] : memref<1x128xf32, #tpu.memory_space<vmem>>, vector<1x128xf32>
      %25 = vector.shape_cast %24 : vector<1x128xf32> to vector<1x128xf32>
      %26 = vector.broadcast %25 : vector<1x128xf32> to vector<32x128xf32>
      %c0_16 = arith.constant 0 : index
      %c0_17 = arith.constant 0 : index
      %27 = vector.load %arg7[%c0_16, %c0_17] : memref<32x128xf32, #tpu.memory_space<vmem>>, vector<32x128xf32>
      tpu.vector_store %arg7[%c0_16, %c0_17], %26 {strides = array<i32>} : memref<32x128xf32, #tpu.memory_space<vmem>>, vector<32x128xf32>,
    } else {
    }
    %c0 = arith.constant 0 : index
    %c0_1 = arith.constant 0 : index
    %c0_2 = arith.constant 0 : index
    %3 = vector.load %arg2[%c0, %c0_1, %c0_2] : memref<1x32x16xf32, #tpu.memory_space<vmem>>, vector<1x32x16xf32>
    %4 = vector.shape_cast %3 : vector<1x32x16xf32> to vector<32x16xf32>
    %5 = arith.truncf %4 : vector<32x16xf32> to vector<32x16xbf16>
    %6 = arith.index_cast %arg1 : i32 to index
    %c0_3 = arith.constant 0 : index
    %c0_4 = arith.constant 0 : index
    %7 = vector.load %arg3[%6, %c0_3, %c0_4] : memref<4x16x128xbf16, #tpu.memory_space<vmem>>, vector<1x16x128xbf16>
    %8 = vector.shape_cast %7 : vector<1x16x128xbf16> to vector<16x128xbf16>
    %cst = arith.constant dense<0.000000e+00> : vector<32x128xf32>
    %9 = tpu.matmul %5, %8, %cst {dimension_numbers = #tpu.dot_dimension_numbers<[1], [0], [0], [1], [0, 0, 1, 1], [], []>} : vector<32x16xbf16>, vector<16x128xbf16>, vector<32x128xf32> -> vector<32x128xf32>
    %10 = arith.index_cast %arg1 : i32 to index
    %c0_5 = arith.constant 0 : index
    %11 = vector.load %arg4[%10, %c0_5] : memref<4x128xf32, #tpu.memory_space<vmem>>, vector<1x128xf32>
    %12 = vector.broadcast %11 : vector<1x128xf32> to vector<32x128xf32>
    %13 = arith.addf %9, %12 : vector<32x128xf32>
    %cst_6 = arith.constant 0.000000e+00 : f32
    %14 = vector.broadcast %cst_6 : f32 to vector<32x128xf32>
    %15 = arith.maximumf %13, %14 : vector<32x128xf32>
    %c0_7 = arith.constant 0 : index
    %c0_8 = arith.constant 0 : index
    %16 = vector.load %arg7[%c0_7, %c0_8] : memref<32x128xf32, #tpu.memory_space<vmem>>, vector<32x128xf32>
    %17 = arith.truncf %15 : vector<32x128xf32> to vector<32x128xbf16>
    %18 = arith.index_cast %arg1 : i32 to index
    %c0_9 = arith.constant 0 : index
    %c0_10 = arith.constant 0 : index
    %19 = vector.load %arg5[%18, %c0_9, %c0_10] : memref<4x128x128xbf16, #tpu.memory_space<vmem>>, vector<1x128x128xbf16>
    %20 = vector.shape_cast %19 : vector<1x128x128xbf16> to vector<128x128xbf16>
    %cst_11 = arith.constant dense<0.000000e+00> : vector<32x128xf32>
    %21 = tpu.matmul %17, %20, %cst_11 {dimension_numbers = #tpu.dot_dimension_numbers<[1], [0], [0], [1], [0, 0, 1, 1], [], []>} : vector<32x128xbf16>, vector<128x128xbf16>, vector<32x128xf32> -> vector<32x128xf32>
    %22 = arith.addf %16, %21 : vector<32x128xf32>
    %c0_12 = arith.constant 0 : index
    %c0_13 = arith.constant 0 : index
    %23 = vector.load %arg7[%c0_12, %c0_13] : memref<32x128xf32, #tpu.memory_space<vmem>>, vector<32x128xf32>
    tpu.vector_store %arg7[%c0_12, %c0_13], %22 {strides = array<i32>} : memref<32x128xf32, #tpu.memory_space<vmem>>, vector<32x128xf32>,
    return
  }
  func.func @transform_0(%arg0: i32, %arg1: i32) -> (i32, i32, i32) {
    %c0_i32 = arith.constant 0 : i32
    %c0_i32_0 = arith.constant 0 : i32
    return %arg1, %arg0, %c0_i32 : i32, i32, i32
  }
  func.func @transform_1(%arg0: i32, %arg1: i32) -> (i32, i32, i32) {
    %c0_i32 = arith.constant 0 : i32
    %c0_i32_0 = arith.constant 0 : i32
    %c0_i32_1 = arith.constant 0 : i32
    %c0_i32_2 = arith.constant 0 : i32
    return %c0_i32, %c0_i32_0, %c0_i32_1 : i32, i32, i32
  }
  func.func @transform_2(%arg0: i32, %arg1: i32) -> (i32, i32) {
    %c0_i32 = arith.constant 0 : i32
    %c0_i32_0 = arith.constant 0 : i32
    %c0_i32_1 = arith.constant 0 : i32
    return %c0_i32, %c0_i32_0 : i32, i32
  }
  func.func @transform_3(%arg0: i32, %arg1: i32) -> (i32, i32, i32) {
    %c0_i32 = arith.constant 0 : i32
    %c0_i32_0 = arith.constant 0 : i32
    %c0_i32_1 = arith.constant 0 : i32
    %c0_i32_2 = arith.constant 0 : i32
    return %c0_i32, %c0_i32_0, %c0_i32_1 : i32, i32, i32
  }
  func.func @transform_4(%arg0: i32, %arg1: i32) -> (i32, i32) {
    %c0_i32 = arith.constant 0 : i32
    %c0_i32_0 = arith.constant 0 : i32
    %c0_i32_1 = arith.constant 0 : i32
    return %c0_i32, %c0_i32_0 : i32, i32
  }
  func.func @transform_5(%arg0: i32, %arg1: i32) -> (i32, i32) {
    %c0_i32 = arith.constant 0 : i32
    %c0_i32_0 = arith.constant 0 : i32
    return %arg0, %c0_i32 : i32, i32
  }
}

</mosaic_0001>

<bundles_post_ra>
// kernel: tpu_custom_call.1
= control target key start
LH: loop header
LB: loop body
LE: loop exit
PB: predicated region body
PF: predicated region fallthrough
CT: control target
= control target key end

     0   :  { %10 = vsyncpa [#allocation3], 0  ;;  %s1037_s0 = inlined_call_operand.vmem [shape: f32[4,64,16], index: 0, kind: input, shape index: {}]   ;;  %s1038_s1 = inlined_call_operand.vmem [shape: bf16[4,16,128], index: 1, kind: input, shape index: {}]   ;;  %s1039_s2 = inlined_call_operand.vmem [shape: f32[4,128], index: 2, kind: input, shape index: {}]   ;;  %s1040_s3 = inlined_call_operand.vmem [shape: bf16[4,128,128], index: 3, kind: input, shape index: {}]   ;;  %s1041_s4 = inlined_call_operand.vmem [shape: f32[1,128], index: 4, kind: input, shape index: {}]   ;;  %s1042_s5 = inlined_call_operand.hbm [shape: f32[64,128], index: 5, kind: output, shape index: {}]  }
   0x1   :  { %12 = vsyncpa [#allocation3 + $0x1], 0  ;;  %s864_s18 = smov 0   ;;  %s866_s19 = smov 0  }
   0x2   :  { %s868_s20 = smov 0   ;;  %s870_s21 = smov 0  }
   0x3   :  { %s872_s22 = smov 0   ;;  %s874_s23 = smov 0  }
   0x4   :  { %s876_s24 = smov 0   ;;  %s878_s25 = smov 0  }
   0x5 LB: > { %s579_s26 = sadd.s32 4294967295, %s829_s25   ;;  %s580_s27 = sadd.s32 4294967294, %s829_s25   ;;  %s829_s25 = sphi %s878_s25, %s18_s25   ;;  %s825_s24 = sphi %s876_s24, %s1054_s24   ;;  %s821_s23 = sphi %s874_s23, %s1053_s23   ;;  %s817_s22 = sphi %s872_s22, %s1052_s22   ;;  %s813_s21 = sphi %s870_s21, %s1051_s21   ;;  %s809_s20 = sphi %s868_s20, %s1050_s20   ;;  %s805_s19 = sphi %s866_s19, %s1049_s19   ;;  %s801_s18 = sphi %s864_s18, %s1048_s18  }
   0x6   : > { %s27_s28 = sadd.s32 1, %s821_s23  ;;  %s30_s29 = sadd.s32 1, %s825_s24 }
   0x7   : > { %p28_p0 = scmp.ge.s32.totalorder %s27_s28, 4  ;;  %p159_p1 = scmp.ne.s32.totalorder %s809_s20, %s805_s19 }
   0x8   : > { %p160_p2 = scmp.eq.s32.totalorder %s579_s26, 7  ;;  %p165_p4 = scmp.ne.s32.totalorder %s805_s19, %s801_s18 }
   0x9   : > { %s1056_s28 = smov (%p28_p0, %s27_s28), 0  ;;  %s1058_s29 = smov (!%p28_p0, %s30_s29), %s825_s24 }
   0xa   : > { %p913_p3 = por %p160_p2, %p159_p1  ;;  %p32_p5 = scmp.ge.s32.totalorder %s1058_s29, 2 }
   0xb   : > { %p166_p6 = scmp.eq.s32.totalorder %s580_s27, 7  ;;  %p583_p7 = scmp.ge.s32.totalorder %s829_s25, 1 }
   0xc   : > { %p209_p8 = scmp.lt.s32.totalorder %s829_s25, 9  ;;  %s1060_s29 = smov (%p32_p5, %s1058_s29), 0 }
   0xd   : > { %1045 = sst [smem:[#allocation5_spill]] %s1060_s29  ;;  %p923_p9 = por %p166_p6, %p165_p4 }
   0xe   : > { %p210_p10 = pnand %p583_p7, %p209_p8  ;;  %s146_s7 = ssub.s32 %s825_s24, %s1060_s29 }
   0xf   : > { %s149_s8 = sadd.s32 1, %s809_s20  ;;  %p147_p11 = scmp.eq.s32.totalorder %s146_s7, 0 }
  0x10   : > { %213 = sbr.rel (%p210_p10) target bundleno = 492 (0x1ec), region = 40  ;;  %s238_s10 = sand.u32 (!%p210_p10), 1, %s805_s19  }
  0x11   : > { %s931_s9 = scalar_select %p147_p11, %s809_s20, %s149_s8  }
  0x12   : > { %s585_s11 = sshll.u32 (!%p210_p10), %s817_s22, 2  ;;  %s584_s12 = sshll.u32 (!%p210_p10), %s238_s10, 5 }
  0x13   : > { %p242_p12 = scmp.lt.s32.totalorder (!%p210_p10), %s813_s21, 3  ;;  %p244_p13 = scmp.lt.s32.totalorder (!%p210_p10), %s585_s11, 7 }
  0x14   : > { %s942_s7 = scalar_lea.vmem (!%p210_p10), [#allocation2], %s584_s12  ;;  %p588_p0 = scmp.ne.s32.totalorder (!%p210_p10), %s813_s21, 0 }
  0x17   : > { %s243_s13 = scalar_select %p242_p12, %s813_s21, 3 }
  0x18   : > { %s1062_s11 = smov (!%p244_p13, %s585_s11), 7  ;;  %256 = sbr.rel (%p588_p0) target bundleno = 31 (0x1f), region = 44 }
  0x19   : > { %s586_s14 = sshll.u32 %s243_s13, 3  ;;  %v589_v0 = vld [vmem:[%s1041_s4] ss:$0 sm:$0xff] (!%p588_p0) }
  0x1a   : > { %s247_s15 = sadd.s32 %s586_s14, %s1062_s11  ;;  %264 = vst [vmem:[%s942_s7] sm:$0xff] (!%p588_p0), %v589_v0  ;;  %265 = vst [vmem:[%s942_s7 + $0x8] sm:$0xff] (!%p588_p0), %v589_v0 }
  0x1b   : > { %s587_s16 = sshll.u32 %s247_s15, 3  ;;  %266 = vst [vmem:[%s942_s7 + $0x10] sm:$0xff] (!%p588_p0), %v589_v0  ;;  %267 = vst [vmem:[%s942_s7 + $0x18] sm:$0xff] (!%p588_p0), %v589_v0 }
  0x1c   : > { %s249_s27 = scalar_lea.vmem %s1037_s0, %s587_s16 }
  0x1f PF: > { %s611_s11 = sshll.u32 %s813_s21, 3  ;;  %v268_v1 = vld [vmem:[%s249_s27] sm:$0xff]  ;;  %v269_v2 = vld [vmem:[%s249_s27 + $0x8] sm:$0xff]  ;;  %vm291_vm0 = vcmask 130048   ;;  %s612_s12 = sshll.u32 %s813_s21, 6  ;;  %v270_v4 = vld [vmem:[%s249_s27 + $0x10] sm:$0xff] }
  0x20   : > { %s276_s29 = scalar_lea.vmem %s1038_s1, %s611_s11  ;;  %v272_v3 = vpack.c.bf16 %v269_v2, %v268_v1  ;;  %v271_v5 = vld [vmem:[%s249_s27 + $0x18] sm:$0xff]  ;;  %s359_s17 = scalar_lea.vmem %s1040_s3, %s612_s12 }
  0x21   : > { %v726_v6 = vld [vmem:[%s276_s29] sm:$0xff]   ;;  %v273_v8 = vpack.c.bf16 %v271_v5, %v270_v4  ;;  %v728_v9 = vld [vmem:[%s359_s17 + $0x8] sm:$0xff]   ;;  %v729_v10 = vld [vmem:[%s359_s17 + $0x10] sm:$0xff]   ;;  %s279_s8 = scalar_lea.vmem %s1039_s2, %s813_s21  ;;  %s613_s21 = sshll.u32 %s817_s22, 9 }
  0x22   : > { %629 = vmatprep.mubr.msk.bf16.mxu0 %vm291_vm0, %v272_v3  ;;  %v727_v7 = vld [vmem:[%s359_s17] sm:$0xff]   ;;  %627 = vmatprep.subr.bf16.mxu0 %v726_v6  ;;  %v730_v11 = vld [vmem:[%s359_s17 + $0x18] sm:$0xff]   ;;  %v732_v13 = vld [vmem:[%s359_s17 + $0x28] sm:$0xff]   ;;  %s495_s11 = sshll.u32 %s942_s7, 4  ;;  %s976_s14 = scalar_lea.hbm %s1042_s5, %s613_s21  ;;  %s978_s11 = int_to_ptr.vmem [resolvable:$true] %s495_s11 }
  0x23   : > { %628 = vmatpush3.bf16.msra.mxu0 %v726_v6  ;;  %633 = vmatprep.subr.bf16.mxu1 %v727_v7  ;;  %v731_v12 = vld [vmem:[%s359_s17 + $0x20] sm:$0xff]   ;;  %v733_v14 = vld [vmem:[%s359_s17 + $0x30] sm:$0xff]   ;;  %v734_v15 = vld [vmem:[%s359_s17 + $0x38] sm:$0xff]   ;;  %s985_s22 = scalar_lea.sflag [#allocation3], %s238_s10  ;;  %s735_s29 = scalar_lea.vmem %s978_s11, 512 }
  0x24   : > { %634 = vmatpush3.bf16.msra.mxu1 %v727_v7  ;;  %v592_v16 = vld [vmem:[%s279_s8] ss:$0 sm:$0xff]  ;;  %v353_v31 = vld [vmem:[%s942_s7 + $0x10] sm:$0xff]  ;;  %v354_v34 = vld [vmem:[%s942_s7 + $0x18] sm:$0xff]  ;;  %p736_p1 = scmp.ne.s32.totalorder %s978_s11, %s735_s29  ;;  %s831_s15 = smov [#allocation2]  }
  0x25   : > { %635 = vmatprep.subr.bf16.mxu1 %v728_v9  ;;  %v351_v32 = vld [vmem:[%s942_s7] sm:$0xff]  ;;  %v352_v37 = vld [vmem:[%s942_s7 + $0x8] sm:$0xff]  ;;  %s739_s16 = sshll.u32 %s831_s15, 4  ;;  %s740_s16 = int_to_ptr.vmem [resolvable:$false] %s739_s16 }
  0x26   : > { %630 = vmatmul.mubr.msk.bf16.vlgmr.msra.gmra.mrb[0].mxu0 %vm291_vm0, %v273_v8  ;;  %p737_p2 = pnand %p736_p1, %p913_p3  ;;  %s741_s17 = scalar_lea.vmem %s740_s16, 1024 }
  0x27   : > { %p742_p5 = scmp.lt.s32.totalorder %s978_s11, %s740_s16  ;;  %p743_p6 = scmp.lt.s32.totalorder %s741_s17, %s735_s29 }
  0x28   : > { %636 = vmatpush3.bf16.msra.mxu1 %v728_v9  ;;  %p738_p4 = pneg %p737_p2 }
  0x29   : > { %637 = vmatprep.subr.bf16.mxu1 %v729_v10  ;;  %p744_p7 = por %p743_p6, %p742_p5 }
  0x2b   : > { %p745_p8 = pnand %p744_p7, %p738_p4 }
  0x2c   : > { %638 = vmatpush3.bf16.msra.mxu1 %v729_v10 }
  0x2d   : > { %639 = vmatprep.subr.bf16.mxu1 %v730_v11 }
  0x30   : > { %640 = vmatpush3.bf16.msra.mxu1 %v730_v11 }
  0x31   : > { %641 = vmatprep.subr.bf16.mxu1 %v731_v12 }
  0x34   : > { %642 = vmatpush3.bf16.msra.mxu1 %v731_v12 }
  0x35   : > { %643 = vmatprep.subr.bf16.mxu1 %v732_v13 }
  0x38   : > { %644 = vmatpush3.bf16.msra.mxu1 %v732_v13 }
  0x39   : > { %645 = vmatprep.subr.bf16.mxu1 %v733_v14 }
  0x3c   : > { %646 = vmatpush3.bf16.msra.mxu1 %v733_v14 }
  0x3d   : > { %647 = vmatprep.subr.bf16.mxu1 %v734_v15 }
  0x40   : > { %648 = vmatpush3.bf16.msra.mxu1 %v734_v15 }
  0xf9   : > { %v631_v17 = vpop.f32.mrb[0].mxu0 }
  0xfa   : > { %v341_v18 = vadd.f32 %v631_v17, %v592_v16  ;;  %v332_v19 = vpop.f32.mrb[1].mxu0 }
  0xfb   : > { %v333_v20 = vadd.f32 %v592_v16, %v332_v19  ;;  %v632_v21 = vpop.f32.mrb[2].mxu0 }
  0xfc   : > { %v344_v22 = vadd.f32 %v632_v21, %v592_v16  ;;  %v335_v23 = vpop.f32.mrb[3].mxu0  ;;  %v349_v25 = vmax.f32 %v341_v18, 0.0 }
  0xfd   : > { %v336_v24 = vadd.f32 %v592_v16, %v335_v23  ;;  %v347_v27 = vmax.f32 %v333_v20, 0.0 }
  0xfe   : > { %v350_v26 = vmax.f32 %v344_v22, 0.0 }
  0xff   : > { %v348_v28 = vmax.f32 %v336_v24, 0.0 }
 0x100   : > { %v356_v29 = vpack.c.bf16 %v350_v26, %v349_v25 }
 0x101   : > { %v355_v30 = vpack.c.bf16 %v348_v28, %v347_v27 }
 0x103   : > { %649 = vmatprep.mubr.bf16.mxu1 %v355_v30 }
 0x104   : > { %650 = vmatmul.mubr.bf16.vlgmr.msra.gmra.mrb[0].mxu1 %v356_v29 }
 0x1d7   : > { %v651_v33 = vpop.f32.mrb[0].mxu1 }
 0x1d8   : > { %v475_v35 = vadd.f32 %v651_v33, %v353_v31  ;;  %v458_v36 = vpop.f32.mrb[1].mxu1 }
 0x1d9   : > { %v473_v38 = vadd.f32 %v458_v36, %v351_v32  ;;  %v652_v39 = vpop.f32.mrb[2].mxu1 }
 0x1da   : > { %479 = vst [vmem:[%s942_s7 + $0x10] sm:$0xff] %v475_v35  ;;  %v476_v40 = vadd.f32 %v652_v39, %v354_v34  ;;  %v461_v41 = vpop.f32.mrb[3].mxu1 }
 0x1db   : > { %477 = vst [vmem:[%s942_s7] sm:$0xff] %v473_v38  ;;  %v474_v42 = vadd.f32 %v461_v41, %v352_v37 }
 0x1dc   : > { %480 = vst [vmem:[%s942_s7 + $0x18] sm:$0xff] %v476_v40 }
 0x1dd   : > { %478 = vst [vmem:[%s942_s7 + $0x8] sm:$0xff] %v474_v42 }
 0x1de   : > { %748 = shalt.err (!%p745_p8)
}
 0x1df   : > { %s749_s10 = scalar_lea.hbm %s976_s14, 512  ;;  %s753_s27 = scalar_lea.hbm %s1042_s5, 1024 }
 0x1e0   : > { %p750_p10 = scmp.ne.s32.totalorder %s976_s14, %s749_s10  ;;  %p754_p13 = scmp.lt.u32.totalorder %s976_s14, %s1042_s5 }
 0x1e1   : > { %p755_p0 = scmp.lt.u32.totalorder %s753_s27, %s749_s10  ;;  %p757_p2 = scmp.lt.u32.totalorder %s749_s10, %s976_s14 }
 0x1e2   : > { %p751_p11 = pnand %p750_p10, %p913_p3 }
 0x1e3   : > { %p756_p1 = por %p755_p0, %p754_p13 }
 0x1e4   : > { %p752_p12 = pneg %p751_p11 }
 0x1e5   : > { %p758_p4 = por %p757_p2, %p756_p1 }
 0x1e7   : > { %p759_p5 = pnand %p758_p4, %p752_p12 }
 0x1e9   : > { %762 = shalt.err (!%p759_p5)
}
 0x1ea   : > { %s832_s12 = smov 128   ;;  %s833_s13 = smov 8  }
 0x1eb   : > { %653 = dma.vmem_to_hbm [thread:$0]  (%p913_p3), %s978_s11, 512, %s976_s14, %s985_s22, %s832_s12, %s832_s12, %s833_s13  }
 0x1ec PF: > { %p659_p6 = scmp.ge.s32.totalorder %s829_s25, 2  ;;  %s510_s29 = sand.u32 1, %s801_s18  }
 0x1ed   : > { %s511_s15 = scalar_lea.sflag [#allocation3], %s510_s29 }
 0x1ee   : > { %p656_p7 = pnand %p659_p6, %p923_p9 }
 0x1f0   : > { %796 = dma.done.wait (!%p656_p7), %s511_s15, 512  }
 0x1f1   : > { %798 = vsyncadd (!%p656_p7), %s511_s15, 4294966784  ;;  %s18_s25 = sadd.s32 1, %s829_s25   ;;  %s1047_s30 = sld [smem:[#allocation5_spill]] }
 0x1f2   : > { %p15_p8 = scmp.ge.s32.totalorder %s18_s25, 10   ;;  %s1048_s18 = smov %s805_s19 }
 0x1f3   : > { %s1049_s19 = smov %s809_s20  ;;  %s1050_s20 = smov %s931_s9 }
 0x1f4   : > { %s1051_s21 = smov %s821_s23  ;;  %s1052_s22 = smov %s825_s24 }
 0x1f5   : > { %s1053_s23 = smov %s1056_s28  ;;  %17 = sbr.rel (!%p15_p8) target bundleno = 5 (0x5), region = 82 }
 0x1f7   : > { %s1054_s24 = smov %s1047_s30 }
 0x1fc   :  { %516 = vsyncpa [#allocation3], 1 }
 0x1fd   :  { %518 = vsyncpa [#allocation3 + $0x1], 1 }

</bundles_post_ra>
